<compile_context>
chip_gen: v7x
topology: tpu7x:2x2x1
jax: 0.10.0
libtpu: 0.0.40
codegen_flags: <defaults>
</compile_context>

<pallas_src>
import jax
import jax.numpy as jnp
from jax.experimental import pallas as pl
from jax.experimental.pallas import tpu as pltpu

EPS_BN = 1e-5
EPS_COS = 1e-8


# --------------------------- fused Pallas kernel ----------------------------

def _stgcp_kernel(a_ref, x_ref, w1_ref, w2_ref, we_ref, w3_ref, w4_ref,
                  vec_ref, loss_ref):
    a = a_ref[...]            # (N, N)    bf16 normalized adjacency
    x_cat = x_ref[...]        # (N, 2*IN) f32  -> [x1 | x2]
    vecs = vec_ref[...]       # (8, MAXW) f32  packed small vectors

    def vec(row, width):
        return vecs[row:row + 1, 0:width]          # static slice -> (1, width)

    def gcn(x_f32, w_ref, b):
        w = w_ref[...]                              # bf16 block-diag weight
        f_in, f_out = w.shape
        xb = x_f32.astype(jnp.bfloat16)
        if f_out < f_in:
            # cheaper ordering when output width is smaller: A @ (X @ W)
            xw = jnp.dot(xb, w, preferred_element_type=jnp.float32)
            y = jnp.dot(a, xw.astype(jnp.bfloat16),
                        preferred_element_type=jnp.float32)
        else:
            ax = jnp.dot(a, xb, preferred_element_type=jnp.float32)
            y = jnp.dot(ax.astype(jnp.bfloat16), w,
                        preferred_element_type=jnp.float32)
        return y + b

    def bn_relu(y, g, bt):
        # single-pass batch stats: var = E[x^2] - E[x]^2 (torch biased variance)
        mean = jnp.mean(y, axis=0, keepdims=True)
        mean_sq = jnp.mean(y * y, axis=0, keepdims=True)
        var = mean_sq - mean * mean
        out = (y - mean) * jax.lax.rsqrt(var + EPS_BN) * g + bt
        return jnp.maximum(out, 0.0)

    w1_out = w1_ref.shape[1]
    w2_out = w2_ref.shape[1]
    w3_out = w3_ref.shape[1]
    w4_out = w4_ref.shape[1]

    # ---- fused two-branch chain ----
    h = gcn(x_cat, w1_ref, vec(0, w1_out))                    # encoder_conv1
    h = bn_relu(h, vec(1, w1_out), vec(2, w1_out))
    h = gcn(h, w2_ref, vec(3, w2_out))                        # encoder_conv2
    # encoder_to_decoder: nn.Linear(h2,h2,bias=False); weight pre-transposed
    # (and block-diagonalized) in the wrapper -> plain jnp.dot, no relayout.
    rep = jnp.dot(h.astype(jnp.bfloat16), we_ref[...],
                  preferred_element_type=jnp.float32)
    d = gcn(rep, w3_ref, vec(4, w3_out))                      # decoder_conv1
    d = bn_relu(d, vec(5, w3_out), vec(6, w3_out))
    r_cat = gcn(d, w4_ref, vec(7, w4_out))                    # decoder_conv2

    # loss = MSE(x1, r1) + MSE(x2, r2) - cos(mean_nodes(r1), mean_nodes(r2))
    diff = x_cat - r_cat
    # both halves have identical width, so MSE1 + MSE2 == 2 * mean over all cols
    mse_sum = 2.0 * jnp.mean(diff * diff)

    m_cat = jnp.mean(r_cat, axis=0, keepdims=True)            # (1, 2*IN)
    in1 = w4_out // 2
    m1 = m_cat[:, :in1]                                       # global_mean_pool(r1)
    m2 = m_cat[:, in1:]                                       # global_mean_pool(r2)
    num = jnp.sum(m1 * m2)
    n1 = jnp.maximum(jnp.sqrt(jnp.sum(m1 * m1)), EPS_COS)
    n2 = jnp.maximum(jnp.sqrt(jnp.sum(m2 * m2)), EPS_COS)
    loss_ref[0, 0] = mse_sum - num / (n1 * n2)


# ------------------------------ wrapper --------------------------------------

def _blkdiag2(w):
    """blkdiag(W, W) for the lane-concatenated two-branch chain."""
    fi, fo = w.shape
    z = jnp.zeros((fi, fo), w.dtype)
    return jnp.concatenate(
        [jnp.concatenate([w, z], axis=1),
         jnp.concatenate([z, w], axis=1)], axis=0)


def _gcn_flops(n, fi, fo):
    if fo < fi:
        return 2 * n * fi * fo + 2 * n * n * fo
    return 2 * n * n * fi + 2 * n * fi * fo


def stgcp_fused_loss(a_hat, x1, x2, params):
    n, in_dim = x1.shape
    h1x2 = params["enc1_w"].shape[1]     # 2 * conv_hidden1
    h2 = params["enc2_w"].shape[1]

    # ---- branch fusion operands (bf16 MXU feed) ----
    x_cat = jnp.concatenate([x1, x2], axis=1).astype(jnp.float32)
    a_bf = a_hat.astype(jnp.bfloat16)
    w1 = _blkdiag2(params["enc1_w"]).astype(jnp.bfloat16)
    w2 = _blkdiag2(params["enc2_w"]).astype(jnp.bfloat16)
    # nn.Linear stores W as (out, in); y = h @ W^T -> pre-transpose once here.
    we = _blkdiag2(params["e2d_w"].T).astype(jnp.bfloat16)
    w3 = _blkdiag2(params["dec1_w"]).astype(jnp.bfloat16)
    w4 = _blkdiag2(params["dec2_w"]).astype(jnp.bfloat16)

    # ---- pack the eight (1,F) vectors into a single (8, maxw) bank ----
    def tile2(v):
        return jnp.concatenate([v, v])[None, :].astype(jnp.float32)

    rows = [tile2(params["enc1_b"]), tile2(params["enc1_gamma"]),
            tile2(params["enc1_beta"]), tile2(params["enc2_b"]),
            tile2(params["dec1_b"]), tile2(params["dec1_gamma"]),
            tile2(params["dec1_beta"]), tile2(params["dec2_b"])]
    maxw = max(r.shape[1] for r in rows)
    vec_bank = jnp.concatenate(
        [jnp.pad(r, ((0, 0), (0, maxw - r.shape[1]))) for r in rows], axis=0)

    args = (a_bf, x_cat, w1, w2, we, w3, w4, vec_bank)

    flops = (_gcn_flops(n, 2 * in_dim, h1x2 * 2)
             + _gcn_flops(n, h1x2 * 2, 2 * h2)
             + 2 * n * (2 * h2) * (2 * h2)
             + _gcn_flops(n, 2 * h2, h1x2 * 2)
             + _gcn_flops(n, h1x2 * 2, 2 * in_dim))
    bytes_accessed = sum(int(v.size) * v.dtype.itemsize for v in args) + 4

    vmem = pl.BlockSpec(memory_space=pltpu.MemorySpace.VMEM)
    smem = pl.BlockSpec(memory_space=pltpu.MemorySpace.SMEM)
    out = pl.pallas_call(
        _stgcp_kernel,
        out_shape=jax.ShapeDtypeStruct((1, 1), jnp.float32),
        in_specs=[vmem] * len(args),
        out_specs=smem,
        cost_estimate=pl.CostEstimate(
            flops=int(flops),
            transcendentals=int(4 * maxw + 8),
            bytes_accessed=int(bytes_accessed)),
    )(*args)
    return out[0, 0]


# ------------------------------ glue (JAX) ----------------------------------

def gcn_norm_dense(edge_index, num_nodes):
    """Dense A_hat = D^-1/2 (A + I) D^-1/2 from an edge_index (2, E).

    Computed ONCE outside the jitted training step (edge_index is static), so
    the scatter-add never sits on the hot path.
    """
    src, dst = edge_index[0], edge_index[1]
    a = jnp.zeros((num_nodes, num_nodes), jnp.float32).at[dst, src].add(1.0)
    a = a + jnp.eye(num_nodes, dtype=jnp.float32)
    deg = jnp.sum(a, axis=1)
    dinv = jax.lax.rsqrt(deg)
    return dinv[:, None] * a * dinv[None, :]


def init_params(key, in_dim, h1, h2):
    def glorot(k, shape):
        lim = jnp.sqrt(6.0 / (shape[0] + shape[1]))
        return jax.random.uniform(k, shape, jnp.float32, -lim, lim)

    ks = jax.random.split(key, 5)
    return {
        # encoder
        "enc1_w": glorot(ks[0], (in_dim, 2 * h1)),
        "enc1_b": jnp.zeros((2 * h1,), jnp.float32),
        "enc1_gamma": jnp.ones((2 * h1,), jnp.float32),
        "enc1_beta": jnp.zeros((2 * h1,), jnp.float32),
        "enc2_w": glorot(ks[1], (2 * h1, h2)),
        "enc2_b": jnp.zeros((h2,), jnp.float32),
        # encoder_to_decoder: nn.Linear(h2, h2, bias=False), W stored (out, in)
        "e2d_w": glorot(ks[2], (h2, h2)),
        # decoder
        "dec1_w": glorot(ks[3], (h2, 2 * h1)),
        "dec1_b": jnp.zeros((2 * h1,), jnp.float32),
        "dec1_gamma": jnp.ones((2 * h1,), jnp.float32),
        "dec1_beta": jnp.zeros((2 * h1,), jnp.float32),
        "dec2_w": glorot(ks[4], (2 * h1, in_dim)),
        "dec2_b": jnp.zeros((in_dim,), jnp.float32),
    }


@jax.jit
def stgcp_forward(params, x1, x2, a_hat):
    """Training-step loss; A_hat is precomputed and passed in."""
    return stgcp_fused_loss(a_hat, x1, x2, params)


# --------------------------------- main --------------------------------------

if __name__ == "__main__":
    N = 64          # number of graph nodes
    IN_DIM = 16     # hidden_dims[0]
    H1 = 16         # hidden_dims[1]  (layer width is 2*H1 = 32)
    H2 = 32         # hidden_dims[2]

    key = jax.random.PRNGKey(0)
    k_x1, k_x2, k_p = jax.random.split(key, 3)

    # synthetic adata features: feat / feat_a
    x1 = jax.random.normal(k_x1, (N, IN_DIM), jnp.float32)
    x2 = jax.random.normal(k_x2, (N, IN_DIM), jnp.float32)

    # deterministic ring graph, both directions (2, 2N)
    idx = jnp.arange(N, dtype=jnp.int32)
    nxt = (idx + 1) % N
    edge_index = jnp.stack(
        [jnp.concatenate([idx, nxt]), jnp.concatenate([nxt, idx])], axis=0
    )

    params = init_params(k_p, IN_DIM, H1, H2)

    # A_hat built once, outside the (jitted) training step.
    a_hat = gcn_norm_dense(edge_index, N)
    a_hat = jax.block_until_ready(a_hat)

    loss = stgcp_forward(params, x1, x2, a_hat)
    loss = jax.block_until_ready(loss)
    loss_item = {"loss": float(loss)}  # mirrors the (loss, {'loss': loss}) return

    print("KERNEL_OK")
</pallas_src>

<mosaic_0001>
module attributes {stable_mosaic.version = 11 : i64} {
  func.func @_stgcp_kernel(%arg0: memref<64x64xbf16, #tpu.memory_space<vmem>>, %arg1: memref<64x32xf32, #tpu.memory_space<vmem>>, %arg2: memref<32x64xbf16, #tpu.memory_space<vmem>>, %arg3: memref<64x64xbf16, #tpu.memory_space<vmem>>, %arg4: memref<64x64xbf16, #tpu.memory_space<vmem>>, %arg5: memref<64x64xbf16, #tpu.memory_space<vmem>>, %arg6: memref<64x32xbf16, #tpu.memory_space<vmem>>, %arg7: memref<8x64xf32, #tpu.memory_space<vmem>>, %arg8: memref<1x1xf32, #tpu.memory_space<smem>>) attributes {dimension_semantics = [], scalar_prefetch = 0 : i64, scratch_operands = 0 : i64, tpu.core_type = #tpu.core_type<tc>} {
    %c0 = arith.constant 0 : index
    %c0_0 = arith.constant 0 : index
    %0 = vector.load %arg0[%c0, %c0_0] : memref<64x64xbf16, #tpu.memory_space<vmem>>, vector<64x64xbf16>
    %c0_1 = arith.constant 0 : index
    %c0_2 = arith.constant 0 : index
    %1 = vector.load %arg1[%c0_1, %c0_2] : memref<64x32xf32, #tpu.memory_space<vmem>>, vector<64x32xf32>
    %c0_3 = arith.constant 0 : index
    %c0_4 = arith.constant 0 : index
    %2 = vector.load %arg7[%c0_3, %c0_4] : memref<8x64xf32, #tpu.memory_space<vmem>>, vector<8x64xf32>
    %3 = vector.extract_strided_slice %2 {offsets = [0, 0], sizes = [1, 64], strides = [1, 1]} : vector<8x64xf32> to vector<1x64xf32>
    %c0_5 = arith.constant 0 : index
    %c0_6 = arith.constant 0 : index
    %4 = vector.load %arg2[%c0_5, %c0_6] : memref<32x64xbf16, #tpu.memory_space<vmem>>, vector<32x64xbf16>
    %5 = arith.truncf %1 : vector<64x32xf32> to vector<64x32xbf16>
    %cst = arith.constant dense<0.000000e+00> : vector<64x32xf32>
    %6 = tpu.matmul %0, %5, %cst {dimension_numbers = #tpu.dot_dimension_numbers<[1], [0], [0], [1], [0, 0, 1, 1], [], []>} : vector<64x64xbf16>, vector<64x32xbf16>, vector<64x32xf32> -> vector<64x32xf32>
    %7 = arith.truncf %6 : vector<64x32xf32> to vector<64x32xbf16>
    %cst_7 = arith.constant dense<0.000000e+00> : vector<64x64xf32>
    %8 = tpu.matmul %7, %4, %cst_7 {dimension_numbers = #tpu.dot_dimension_numbers<[1], [0], [0], [1], [0, 0, 1, 1], [], []>} : vector<64x32xbf16>, vector<32x64xbf16>, vector<64x64xf32> -> vector<64x64xf32>
    %9 = vector.broadcast %3 : vector<1x64xf32> to vector<64x64xf32>
    %10 = arith.addf %8, %9 : vector<64x64xf32>
    %11 = vector.extract_strided_slice %2 {offsets = [1, 0], sizes = [1, 64], strides = [1, 1]} : vector<8x64xf32> to vector<1x64xf32>
    %12 = vector.extract_strided_slice %2 {offsets = [2, 0], sizes = [1, 64], strides = [1, 1]} : vector<8x64xf32> to vector<1x64xf32>
    %cst_8 = arith.constant dense<0.000000e+00> : vector<64xf32>
    %13 = vector.multi_reduction <add>, %10, %cst_8 [0] : vector<64x64xf32> to vector<64xf32>
    %14 = vector.shape_cast %13 : vector<64xf32> to vector<1x64xf32>
    %cst_9 = arith.constant 6.400000e+01 : f32
    %15 = vector.broadcast %cst_9 : f32 to vector<1x64xf32>
    %16 = arith.divf %14, %15 : vector<1x64xf32>
    %17 = arith.mulf %10, %10 : vector<64x64xf32>
    %cst_10 = arith.constant dense<0.000000e+00> : vector<64xf32>
    %18 = vector.multi_reduction <add>, %17, %cst_10 [0] : vector<64x64xf32> to vector<64xf32>
    %19 = vector.shape_cast %18 : vector<64xf32> to vector<1x64xf32>
    %cst_11 = arith.constant 6.400000e+01 : f32
    %20 = vector.broadcast %cst_11 : f32 to vector<1x64xf32>
    %21 = arith.divf %19, %20 : vector<1x64xf32>
    %22 = arith.mulf %16, %16 : vector<1x64xf32>
    %23 = arith.subf %21, %22 : vector<1x64xf32>
    %24 = vector.broadcast %16 : vector<1x64xf32> to vector<64x64xf32>
    %25 = arith.subf %10, %24 : vector<64x64xf32>
    %cst_12 = arith.constant 9.99999974E-6 : f32
    %26 = vector.broadcast %cst_12 : f32 to vector<1x64xf32>
    %27 = arith.addf %23, %26 : vector<1x64xf32>
    %28 = math.rsqrt %27 : vector<1x64xf32>
    %29 = vector.broadcast %28 : vector<1x64xf32> to vector<64x64xf32>
    %30 = arith.mulf %25, %29 : vector<64x64xf32>
    %31 = vector.broadcast %11 : vector<1x64xf32> to vector<64x64xf32>
    %32 = arith.mulf %30, %31 : vector<64x64xf32>
    %33 = vector.broadcast %12 : vector<1x64xf32> to vector<64x64xf32>
    %34 = arith.addf %32, %33 : vector<64x64xf32>
    %cst_13 = arith.constant 0.000000e+00 : f32
    %35 = vector.broadcast %cst_13 : f32 to vector<64x64xf32>
    %36 = arith.maximumf %34, %35 : vector<64x64xf32>
    %37 = vector.extract_strided_slice %2 {offsets = [3, 0], sizes = [1, 64], strides = [1, 1]} : vector<8x64xf32> to vector<1x64xf32>
    %c0_14 = arith.constant 0 : index
    %c0_15 = arith.constant 0 : index
    %38 = vector.load %arg3[%c0_14, %c0_15] : memref<64x64xbf16, #tpu.memory_space<vmem>>, vector<64x64xbf16>
    %39 = arith.truncf %36 : vector<64x64xf32> to vector<64x64xbf16>
    %cst_16 = arith.constant dense<0.000000e+00> : vector<64x64xf32>
    %40 = tpu.matmul %0, %39, %cst_16 {dimension_numbers = #tpu.dot_dimension_numbers<[1], [0], [0], [1], [0, 0, 1, 1], [], []>} : vector<64x64xbf16>, vector<64x64xbf16>, vector<64x64xf32> -> vector<64x64xf32>
    %41 = arith.truncf %40 : vector<64x64xf32> to vector<64x64xbf16>
    %cst_17 = arith.constant dense<0.000000e+00> : vector<64x64xf32>
    %42 = tpu.matmul %41, %38, %cst_17 {dimension_numbers = #tpu.dot_dimension_numbers<[1], [0], [0], [1], [0, 0, 1, 1], [], []>} : vector<64x64xbf16>, vector<64x64xbf16>, vector<64x64xf32> -> vector<64x64xf32>
    %43 = vector.broadcast %37 : vector<1x64xf32> to vector<64x64xf32>
    %44 = arith.addf %42, %43 : vector<64x64xf32>
    %45 = arith.truncf %44 : vector<64x64xf32> to vector<64x64xbf16>
    %c0_18 = arith.constant 0 : index
    %c0_19 = arith.constant 0 : index
    %46 = vector.load %arg4[%c0_18, %c0_19] : memref<64x64xbf16, #tpu.memory_space<vmem>>, vector<64x64xbf16>
    %cst_20 = arith.constant dense<0.000000e+00> : vector<64x64xf32>
    %47 = tpu.matmul %45, %46, %cst_20 {dimension_numbers = #tpu.dot_dimension_numbers<[1], [0], [0], [1], [0, 0, 1, 1], [], []>} : vector<64x64xbf16>, vector<64x64xbf16>, vector<64x64xf32> -> vector<64x64xf32>
    %48 = vector.extract_strided_slice %2 {offsets = [4, 0], sizes = [1, 64], strides = [1, 1]} : vector<8x64xf32> to vector<1x64xf32>
    %c0_21 = arith.constant 0 : index
    %c0_22 = arith.constant 0 : index
    %49 = vector.load %arg5[%c0_21, %c0_22] : memref<64x64xbf16, #tpu.memory_space<vmem>>, vector<64x64xbf16>
    %50 = arith.truncf %47 : vector<64x64xf32> to vector<64x64xbf16>
    %cst_23 = arith.constant dense<0.000000e+00> : vector<64x64xf32>
    %51 = tpu.matmul %0, %50, %cst_23 {dimension_numbers = #tpu.dot_dimension_numbers<[1], [0], [0], [1], [0, 0, 1, 1], [], []>} : vector<64x64xbf16>, vector<64x64xbf16>, vector<64x64xf32> -> vector<64x64xf32>
    %52 = arith.truncf %51 : vector<64x64xf32> to vector<64x64xbf16>
    %cst_24 = arith.constant dense<0.000000e+00> : vector<64x64xf32>
    %53 = tpu.matmul %52, %49, %cst_24 {dimension_numbers = #tpu.dot_dimension_numbers<[1], [0], [0], [1], [0, 0, 1, 1], [], []>} : vector<64x64xbf16>, vector<64x64xbf16>, vector<64x64xf32> -> vector<64x64xf32>
    %54 = vector.broadcast %48 : vector<1x64xf32> to vector<64x64xf32>
    %55 = arith.addf %53, %54 : vector<64x64xf32>
    %56 = vector.extract_strided_slice %2 {offsets = [5, 0], sizes = [1, 64], strides = [1, 1]} : vector<8x64xf32> to vector<1x64xf32>
    %57 = vector.extract_strided_slice %2 {offsets = [6, 0], sizes = [1, 64], strides = [1, 1]} : vector<8x64xf32> to vector<1x64xf32>
    %cst_25 = arith.constant dense<0.000000e+00> : vector<64xf32>
    %58 = vector.multi_reduction <add>, %55, %cst_25 [0] : vector<64x64xf32> to vector<64xf32>
    %59 = vector.shape_cast %58 : vector<64xf32> to vector<1x64xf32>
    %cst_26 = arith.constant 6.400000e+01 : f32
    %60 = vector.broadcast %cst_26 : f32 to vector<1x64xf32>
    %61 = arith.divf %59, %60 : vector<1x64xf32>
    %62 = arith.mulf %55, %55 : vector<64x64xf32>
    %cst_27 = arith.constant dense<0.000000e+00> : vector<64xf32>
    %63 = vector.multi_reduction <add>, %62, %cst_27 [0] : vector<64x64xf32> to vector<64xf32>
    %64 = vector.shape_cast %63 : vector<64xf32> to vector<1x64xf32>
    %cst_28 = arith.constant 6.400000e+01 : f32
    %65 = vector.broadcast %cst_28 : f32 to vector<1x64xf32>
    %66 = arith.divf %64, %65 : vector<1x64xf32>
    %67 = arith.mulf %61, %61 : vector<1x64xf32>
    %68 = arith.subf %66, %67 : vector<1x64xf32>
    %69 = vector.broadcast %61 : vector<1x64xf32> to vector<64x64xf32>
    %70 = arith.subf %55, %69 : vector<64x64xf32>
    %cst_29 = arith.constant 9.99999974E-6 : f32
    %71 = vector.broadcast %cst_29 : f32 to vector<1x64xf32>
    %72 = arith.addf %68, %71 : vector<1x64xf32>
    %73 = math.rsqrt %72 : vector<1x64xf32>
    %74 = vector.broadcast %73 : vector<1x64xf32> to vector<64x64xf32>
    %75 = arith.mulf %70, %74 : vector<64x64xf32>
    %76 = vector.broadcast %56 : vector<1x64xf32> to vector<64x64xf32>
    %77 = arith.mulf %75, %76 : vector<64x64xf32>
    %78 = vector.broadcast %57 : vector<1x64xf32> to vector<64x64xf32>
    %79 = arith.addf %77, %78 : vector<64x64xf32>
    %cst_30 = arith.constant 0.000000e+00 : f32
    %80 = vector.broadcast %cst_30 : f32 to vector<64x64xf32>
    %81 = arith.maximumf %79, %80 : vector<64x64xf32>
    %82 = vector.extract_strided_slice %2 {offsets = [7, 0], sizes = [1, 32], strides = [1, 1]} : vector<8x64xf32> to vector<1x32xf32>
    %c0_31 = arith.constant 0 : index
    %c0_32 = arith.constant 0 : index
    %83 = vector.load %arg6[%c0_31, %c0_32] : memref<64x32xbf16, #tpu.memory_space<vmem>>, vector<64x32xbf16>
    %84 = arith.truncf %81 : vector<64x64xf32> to vector<64x64xbf16>
    %cst_33 = arith.constant dense<0.000000e+00> : vector<64x32xf32>
    %85 = tpu.matmul %84, %83, %cst_33 {dimension_numbers = #tpu.dot_dimension_numbers<[1], [0], [0], [1], [0, 0, 1, 1], [], []>} : vector<64x64xbf16>, vector<64x32xbf16>, vector<64x32xf32> -> vector<64x32xf32>
    %86 = arith.truncf %85 : vector<64x32xf32> to vector<64x32xbf16>
    %cst_34 = arith.constant dense<0.000000e+00> : vector<64x32xf32>
    %87 = tpu.matmul %0, %86, %cst_34 {dimension_numbers = #tpu.dot_dimension_numbers<[1], [0], [0], [1], [0, 0, 1, 1], [], []>} : vector<64x64xbf16>, vector<64x32xbf16>, vector<64x32xf32> -> vector<64x32xf32>
    %88 = vector.broadcast %82 : vector<1x32xf32> to vector<64x32xf32>
    %89 = arith.addf %87, %88 : vector<64x32xf32>
    %90 = arith.subf %1, %89 : vector<64x32xf32>
    %91 = arith.mulf %90, %90 : vector<64x32xf32>
    %92 = vector.shape_cast %91 : vector<64x32xf32> to vector<1x64x32xf32>
    %cst_35 = arith.constant dense<0.000000e+00> : vector<1xf32>
    %93 = vector.multi_reduction <add>, %92, %cst_35 [1, 2] : vector<1x64x32xf32> to vector<1xf32>
    %94 = vector.shape_cast %93 : vector<1xf32> to vector<1x1x1xf32>
    %95 = vector.extract %94[0, 0, 0] : f32 from vector<1x1x1xf32>
    %cst_36 = arith.constant 2.048000e+03 : f32
    %96 = arith.divf %95, %cst_36 : f32
    %cst_37 = arith.constant 2.000000e+00 : f32
    %97 = arith.mulf %cst_37, %96 : f32
    %cst_38 = arith.constant dense<0.000000e+00> : vector<32xf32>
    %98 = vector.multi_reduction <add>, %89, %cst_38 [0] : vector<64x32xf32> to vector<32xf32>
    %99 = vector.shape_cast %98 : vector<32xf32> to vector<1x32xf32>
    %cst_39 = arith.constant 6.400000e+01 : f32
    %100 = vector.broadcast %cst_39 : f32 to vector<1x32xf32>
    %101 = arith.divf %99, %100 : vector<1x32xf32>
    %102 = vector.extract_strided_slice %101 {offsets = [0, 0], sizes = [1, 16], strides = [1, 1]} : vector<1x32xf32> to vector<1x16xf32>
    %103 = vector.extract_strided_slice %101 {offsets = [0, 16], sizes = [1, 16], strides = [1, 1]} : vector<1x32xf32> to vector<1x16xf32>
    %104 = arith.mulf %102, %103 : vector<1x16xf32>
    %105 = vector.shape_cast %104 : vector<1x16xf32> to vector<1x1x16xf32>
    %cst_40 = arith.constant dense<0.000000e+00> : vector<1xf32>
    %106 = vector.multi_reduction <add>, %105, %cst_40 [1, 2] : vector<1x1x16xf32> to vector<1xf32>
    %107 = vector.shape_cast %106 : vector<1xf32> to vector<1x1x1xf32>
    %108 = vector.extract %107[0, 0, 0] : f32 from vector<1x1x1xf32>
    %109 = arith.mulf %102, %102 : vector<1x16xf32>
    %110 = vector.shape_cast %109 : vector<1x16xf32> to vector<1x1x16xf32>
    %cst_41 = arith.constant dense<0.000000e+00> : vector<1xf32>
    %111 = vector.multi_reduction <add>, %110, %cst_41 [1, 2] : vector<1x1x16xf32> to vector<1xf32>
    %112 = vector.shape_cast %111 : vector<1xf32> to vector<1x1x1xf32>
    %113 = vector.extract %112[0, 0, 0] : f32 from vector<1x1x1xf32>
    %114 = math.sqrt %113 : f32
    %cst_42 = arith.constant 9.99999993E-9 : f32
    %115 = arith.maximumf %114, %cst_42 : f32
    %116 = arith.mulf %103, %103 : vector<1x16xf32>
    %117 = vector.shape_cast %116 : vector<1x16xf32> to vector<1x1x16xf32>
    %cst_43 = arith.constant dense<0.000000e+00> : vector<1xf32>
    %118 = vector.multi_reduction <add>, %117, %cst_43 [1, 2] : vector<1x1x16xf32> to vector<1xf32>
    %119 = vector.shape_cast %118 : vector<1xf32> to vector<1x1x1xf32>
    %120 = vector.extract %119[0, 0, 0] : f32 from vector<1x1x1xf32>
    %121 = math.sqrt %120 : f32
    %cst_44 = arith.constant 9.99999993E-9 : f32
    %122 = arith.maximumf %121, %cst_44 : f32
    %123 = arith.mulf %115, %122 : f32
    %124 = arith.divf %108, %123 : f32
    %125 = arith.subf %97, %124 : f32
    %c0_45 = arith.constant 0 : index
    %c0_46 = arith.constant 0 : index
    %126 = memref.load %arg8[%c0_45, %c0_46] : memref<1x1xf32, #tpu.memory_space<smem>>
    memref.store %125, %arg8[%c0_45, %c0_46] : memref<1x1xf32, #tpu.memory_space<smem>>
    return
  }
}

</mosaic_0001>

<bundles_post_ra>
// kernel: stgcp_forward.1
= control target key start
LH: loop header
LB: loop body
LE: loop exit
PB: predicated region body
PF: predicated region fallthrough
CT: control target
= control target key end

     0   :  { %vm76_vm0 = vcmask 523264   ;;  %s2003_s0 = inlined_call_operand.vmem [shape: bf16[64,64], index: 0, kind: input, shape index: {}]   ;;  %s2004_s1 = inlined_call_operand.vmem [shape: f32[64,32], index: 1, kind: input, shape index: {}]   ;;  %s2005_s2 = inlined_call_operand.vmem [shape: bf16[32,64], index: 2, kind: input, shape index: {}]   ;;  %s2006_s3 = inlined_call_operand.vmem [shape: bf16[64,64], index: 3, kind: input, shape index: {}]   ;;  %s2007_s4 = inlined_call_operand.vmem [shape: bf16[64,64], index: 4, kind: input, shape index: {}]   ;;  %s2008_s5 = inlined_call_operand.vmem [shape: bf16[64,64], index: 5, kind: input, shape index: {}]   ;;  %s2009_s6 = inlined_call_operand.vmem [shape: bf16[64,32], index: 6, kind: input, shape index: {}]   ;;  %s2010_s7 = inlined_call_operand.vmem [shape: f32[8,64], index: 7, kind: input, shape index: {}]   ;;  %s2011_s8 = inlined_call_operand.hbm [shape: f32[1,1], index: 8, kind: output, shape index: {}]  }
   0x1   :  { %v39_v0 = vld [vmem:[%s2004_s1] sm:$0xff]  ;;  %v40_v1 = vld [vmem:[%s2004_s1 + $0x8] sm:$0xff]  ;;  %v41_v2 = vld [vmem:[%s2004_s1 + $0x10] sm:$0xff] }
   0x2   :  { %v52_v3 = vpack.c.bf16 %v40_v1, %v39_v0  ;;  %v42_v4 = vld [vmem:[%s2004_s1 + $0x18] sm:$0xff]  ;;  %v43_v6 = vld [vmem:[%s2004_s1 + $0x20] sm:$0xff]  ;;  %v44_v7 = vld [vmem:[%s2004_s1 + $0x28] sm:$0xff] }
   0x3   :  { %v53_v5 = vpack.c.bf16 %v42_v4, %v41_v2  ;;  %v1686_v8 = vld [vmem:[%s2003_s0] sm:$0xff]   ;;  %v54_v9 = vpack.c.bf16 %v44_v7, %v43_v6  ;;  %v45_v10 = vld [vmem:[%s2004_s1 + $0x30] sm:$0xff]  ;;  %v46_v11 = vld [vmem:[%s2004_s1 + $0x38] sm:$0xff] }
   0x4   :  { %1408 = vmatprep.subr.bf16.mxu0 %v52_v3  ;;  %1416 = vmatprep.mubr.msk.bf16.mxu0 %vm76_vm0, %v1686_v8  ;;  %v1569_v12 = vld [vmem:[%s2005_s2] sm:$0xff]   ;;  %v55_v13 = vpack.c.bf16 %v46_v11, %v45_v10  ;;  %v1702_v14 = vld [vmem:[%s2003_s0 + $0x8] sm:$0xff]   ;;  %v1707_v15 = vld [vmem:[%s2003_s0 + $0x10] sm:$0xff]  }
   0x5   :  { %1409 = vmatpush3.bf16.msra.mxu0 %v52_v3  ;;  %1424 = vmatprep.subr.bf16.mxu1 %v1569_v12 }
   0x6   :  { %1410 = vmatprep.subr.bf16.mxu0 %v53_v5  ;;  %1425 = vmatpush3.bf16.msra.mxu1 %v1569_v12 }
   0x9   :  { %1411 = vmatpush3.bf16.msra.mxu0 %v53_v5 }
   0xa   :  { %1412 = vmatprep.subr.bf16.mxu0 %v54_v9 }
   0xd   :  { %1413 = vmatpush3.bf16.msra.mxu0 %v54_v9 }
   0xe   :  { %1414 = vmatprep.subr.bf16.mxu0 %v55_v13 }
  0x11   :  { %1415 = vmatpush3.bf16.msra.mxu0 %v55_v13 }
  0x14   :  { %1417 = vmatmul.mubr.msk.bf16.vlgmr.msra.gmra.mrb[0].mxu0 %vm76_vm0, %v1702_v14 }
  0x15   :  { %13 = vsyncpa [#allocation3], 0  ;;  %1420 = vmatprep.mubr.msk.bf16.mxu0 %vm76_vm0, %v1707_v15  ;;  %v1716_v16 = vld [vmem:[%s2003_s0 + $0x18] sm:$0xff]   ;;  %v1570_v17 = vld [vmem:[%s2005_s2 + $0x8] sm:$0xff]   ;;  %vm174_vm1 = vcmask 261120   ;;  %v158_v33 = vlaneseq  ;;  %vm1203_vm2 = vcmask 122880  }
  0x16   :  { %1426 = vmatprep.subr.bf16.mxu1 %v1570_v17  ;;  %v1571_v30 = vld [vmem:[%s2006_s3] sm:$0xff]   ;;  %v1572_v31 = vld [vmem:[%s2006_s3 + $0x8] sm:$0xff]   ;;  %v1573_v32 = vld [vmem:[%s2006_s3 + $0x10] sm:$0xff]   ;;  %s1618_s10 = smov 1e-08   ;;  %s1605_s17 = scalar_lea.hbm %s2011_s8, 16 }
  0x17   :  { %1427 = vmatpush3.bf16.msra.mxu1 %v1570_v17  ;;  %1452 = vmatprep.subr.bf16.mxu0 %v1571_v30  ;;  %v1738_v34 = vshrl.u32 %v158_v33, 7  ;;  %v1744_v36 = vld [vmem:[%s2010_s7] sm:$0xff]  ;;  %p1606_p0 = scmp.ne.s32.totalorder %s2011_s8, %s1605_s17  ;;  %p1609_p1 = scmp.lt.u32.totalorder %s1605_s17, %s2011_s8 }
  0x18   :  { %1453 = vmatpush3.bf16.msra.mxu0 %v1571_v30 }
  0x19   :  { %1454 = vmatprep.subr.bf16.mxu0 %v1572_v31  ;;  %v160_v35 = vsub.s32 0, %v1738_v34  ;;  %p1611_p2 = pnand %p1609_p1, %p1606_p0 }
  0x1b   :  { %v161_v37 = vrot.slane %v1744_v36, %v160_v35 }
  0x1c   :  { %1421 = vmatmul.mubr.msk.bf16.gmra.mrb[4].mxu0 %vm76_vm0, %v1716_v16 }
  0x1d   :  { %1455 = vmatpush3.bf16.msra.mxu0 %v1572_v31 }
  0x1e   :  { %1456 = vmatprep.subr.bf16.mxu0 %v1573_v32 }
  0x21   :  { %1457 = vmatpush3.bf16.msra.mxu0 %v1573_v32 }
  0xe7   :  { %v1418_v18 = vpop.f32.mrb[0].mxu0 }
  0xe8   :  { %v123_v19 = vpop.f32.mrb[1].mxu0 }
  0xe9   :  { %v1419_v20 = vpop.f32.mrb[2].mxu0 }
  0xea   :  { %v155_v21 = vpack.c.bf16 %v1419_v20, %v1418_v18  ;;  %v126_v22 = vpop.f32.mrb[3].mxu0 }
  0xeb   :  { %v154_v23 = vpack.c.bf16 %v126_v22, %v123_v19 }
  0xed   :  { %1428 = vmatprep.mubr.msk.bf16.mxu1 %vm174_vm1, %v154_v23 }
  0xee   :  { %1429 = vmatmul.mubr.msk.bf16.vlgmr.msra.gmra.mrb[0].mxu1 %vm174_vm1, %v155_v21 }
  0xef   :  { %v1422_v24 = vpop.f32.mrb[4].mxu0 }
  0xf0   :  { %v139_v25 = vpop.f32.mrb[5].mxu0 }
  0xf1   :  { %v1423_v26 = vpop.f32.mrb[6].mxu0 }
  0xf2   :  { %v157_v27 = vpack.c.bf16 %v1423_v26, %v1422_v24  ;;  %v142_v28 = vpop.f32.mrb[7].mxu0 }
  0xf3   :  { %v156_v29 = vpack.c.bf16 %v142_v28, %v139_v25 }
  0xf5   :  { %1432 = vmatprep.mubr.msk.bf16.mxu1 %vm174_vm1, %v156_v29 }
  0xf6   :  { %1433 = vmatmul.mubr.msk.bf16.gmra.mrb[4].mxu1 %vm174_vm1, %v157_v27 }
  0xf7   :  { %1444 = vmatprep.mubr.msk.bf16.mxu1 %vm76_vm0, %v1686_v8 }
 0x1c1   :  { %v1430_v38 = vpop.f32.mrb[0].mxu1 }
 0x1c2   :  { %v221_v39 = vpop.f32.mrb[1].mxu1  ;;  %v1747_v40 = vadd.f32 %v1430_v38, %v161_v37 }
 0x1c3   :  { %v1749_v41 = vadd.f32 %v221_v39, %v161_v37  ;;  %v1431_v42 = vpop.f32.mrb[2].mxu1 }
 0x1c4   :  { %v224_v43 = vpop.f32.mrb[3].mxu1  ;;  %v1753_v45 = vadd.f32 %v1431_v42, %v161_v37  ;;  %v277_v47 = vmul.f32 %v1747_v40, %v1747_v40  ;;  %v255_v52 = vsel %vm76_vm0, %v1747_v40, 0.0 }
 0x1c5   :  { %v275_v44 = vmul.f32 %v1749_v41, %v1749_v41  ;;  %v1755_v46 = vadd.f32 %v224_v43, %v161_v37  ;;  %v252_v48 = vsel %vm76_vm0, %v1749_v41, 0.0 }
 0x1c6   :  { %v278_v54 = vmul.f32 %v1753_v45, %v1753_v45  ;;  %v286_v60 = vsel %vm76_vm0, %v277_v47, 0.0  ;;  %v257_v61 = vsel %vm76_vm0, %v1753_v45, 0.0 }
 0x1c7   :  { %v253_v49 = vsel %vm76_vm0, %v1755_v46, 0.0  ;;  %v276_v50 = vmul.f32 %v1755_v46, %v1755_v46  ;;  %v283_v53 = vsel %vm76_vm0, %v275_v44, 0.0 }
 0x1c8   :  { %v254_v51 = vadd.f32 %v253_v49, %v252_v48  ;;  %v288_v4 = vsel %vm76_vm0, %v278_v54, 0.0 }
 0x1c9   :  { %v284_v55 = vsel %vm76_vm0, %v276_v50, 0.0  ;;  %v1434_v56 = vpop.f32.mrb[4].mxu1 }
 0x1ca   :  { %v256_v57 = vadd.f32 %v255_v52, %v254_v51  ;;  %v285_v58 = vadd.f32 %v284_v55, %v283_v53  ;;  %v237_v59 = vpop.f32.mrb[5].mxu1  ;;  %v1776_v1 = vadd.f32 %v1434_v56, %v161_v37 }
 0x1cb   :  { %v1774_v62 = vadd.f32 %v237_v59, %v161_v37  ;;  %v1435_v63 = vpop.f32.mrb[6].mxu1 }
 0x1cc   :  { %v287_v0 = vadd.f32 %v286_v60, %v285_v58  ;;  %v258_v2 = vadd.f32 %v257_v61, %v256_v57  ;;  %v240_v3 = vpop.f32.mrb[7].mxu1  ;;  %v249_v11 = vadd.f32 %v1435_v63, %v161_v37  ;;  %v281_v17 = vmul.f32 %v1776_v1, %v1776_v1 }
 0x1cd   :  { %v259_v5 = vsel %vm76_vm0, %v1774_v62, 0.0  ;;  %v279_v6 = vmul.f32 %v1774_v62, %v1774_v62  ;;  %v241_v7 = vadd.f32 %v240_v3, %v161_v37  ;;  %v263_v21 = vsel %vm76_vm0, %v1776_v1, 0.0 }
 0x1ce   :  { %v260_v9 = vadd.f32 %v259_v5, %v258_v2  ;;  %v289_v10 = vadd.f32 %v288_v4, %v287_v0  ;;  %v282_v22 = vmul.f32 %v249_v11, %v249_v11  ;;  %v265_v25 = vsel %vm76_vm0, %v249_v11, 0.0 }
 0x1cf   :  { %v290_v12 = vsel %vm76_vm0, %v279_v6, 0.0  ;;  %v261_v13 = vsel %vm76_vm0, %v241_v7, 0.0  ;;  %v280_v20 = vmul.f32 %v241_v7, %v241_v7  ;;  %v294_v27 = vsel %vm76_vm0, %v281_v17, 0.0 }
 0x1d0   :  { %v291_v18 = vadd.f32 %v290_v12, %v289_v10  ;;  %v262_v19 = vadd.f32 %v261_v13, %v260_v9  ;;  %v296_v30 = vsel %vm76_vm0, %v282_v22, 0.0  ;;  %v327_v0 = vsub.s32 1, %v1738_v34 }
 0x1d1   :  { %v292_v24 = vsel %vm76_vm0, %v280_v20, 0.0  ;;  %v339_v2 = vsub.s32 2, %v1738_v34 }
 0x1d2   :  { %v264_v23 = vadd.f32 %v263_v21, %v262_v19  ;;  %v293_v26 = vadd.f32 %v292_v24, %v291_v18 }
 0x1d3   :  { %v340_v3 = vrot.slane %v1744_v36, %v339_v2 }
 0x1d4   :  { %v266_v28 = vadd.f32 %v265_v25, %v264_v23  ;;  %v295_v29 = vadd.f32 %v294_v27, %v293_v26 }
 0x1d6   :  { %v267_v31 = vrot.slane %v266_v28, 4  ;;  %v297_v32 = vadd.f32 %v296_v30, %v295_v29 }
 0x1d8   :  { %v268_v33 = vadd.f32 %v267_v31, %v266_v28  ;;  %v298_v35 = vrot.slane %v297_v32, 4 }
 0x1da   :  { %v269_v37 = vrot.slane %v268_v33, 2  ;;  %v299_v38 = vadd.f32 %v298_v35, %v297_v32 }
 0x1dc   :  { %v270_v39 = vadd.f32 %v269_v37, %v268_v33  ;;  %v300_v42 = vrot.slane %v299_v38, 2 }
 0x1de   :  { %v271_v43 = vrot.slane %v270_v39, 1  ;;  %v301_v44 = vadd.f32 %v300_v42, %v299_v38 }
 0x1e0   :  { %v272_v47 = vadd.f32 %v271_v43, %v270_v39  ;;  %v302_v48 = vrot.slane %v301_v44, 1 }
 0x1e2   :  { %v274_v49 = vmul.f32 0.015625, %v272_v47  ;;  %v303_v50 = vadd.f32 %v302_v48, %v301_v44  ;;  %v1574_v44 = vld [vmem:[%s2006_s3 + $0x18] sm:$0xff]   ;;  %v1575_v47 = vld [vmem:[%s2007_s4] sm:$0xff]   ;;  %v1576_v48 = vld [vmem:[%s2007_s4 + $0x8] sm:$0xff]  }
 0x1e3   :  { %1458 = vmatprep.subr.bf16.mxu0 %v1574_v44 }
 0x1e4   :  { %v305_v51 = vmul.f32 %v274_v49, %v274_v49  ;;  %v312_v52 = vsub.f32 %v241_v7, %v274_v49  ;;  %v307_v53 = vsub.f32 %v1749_v41, %v274_v49  ;;  %v308_v54 = vsub.f32 %v1755_v46, %v274_v49  ;;  %1459 = vmatpush3.bf16.msra.mxu0 %v1574_v44 }
 0x1e5   :  { %v304_v55 = vmul.f32 0.015625, %v303_v50  ;;  %v309_v56 = vsub.f32 %v1747_v40, %v274_v49  ;;  %v310_v57 = vsub.f32 %v1753_v45, %v274_v49  ;;  %v311_v58 = vsub.f32 %v1774_v62, %v274_v49 }
 0x1e6   :  { %v313_v59 = vsub.f32 %v1776_v1, %v274_v49  ;;  %v314_v60 = vsub.f32 %v249_v11, %v274_v49  ;;  %v328_v41 = vrot.slane %v1744_v36, %v327_v0  ;;  %v440_v0 = vsub.s32 3, %v1738_v34 }
 0x1e7   :  { %v306_v61 = vsub.f32 %v304_v55, %v305_v51 }
 0x1e8   :  { %v441_v2 = vrot.slane %v1744_v36, %v440_v0 }
 0x1e9   :  { %v315_v63 = vadd.f32 1e-05, %v306_v61  ;;  %v1577_v61 = vld [vmem:[%s2007_s4 + $0x10] sm:$0xff]  }
 0x1eb   :  { %1587 = vrsqrt.f32 %v315_v63  ;;  %v1578_v63 = vld [vmem:[%s2007_s4 + $0x18] sm:$0xff]  }
 0x1f5   :  { %v1588_v46 = vpop.eup %1587 }
 0x1f6   :  { %v322_v40 = vmul.f32 %v1588_v46, %v312_v52  ;;  %v317_v4 = vmul.f32 %v1588_v46, %v307_v53  ;;  %v318_v45 = vmul.f32 %v1588_v46, %v308_v54  ;;  %v319_v5 = vmul.f32 %v1588_v46, %v309_v56 }
 0x1f7   :  { %v320_v62 = vmul.f32 %v1588_v46, %v310_v57  ;;  %v321_v6 = vmul.f32 %v1588_v46, %v311_v58  ;;  %v323_v1 = vmul.f32 %v1588_v46, %v313_v59  ;;  %v324_v7 = vmul.f32 %v1588_v46, %v314_v60 }
 0x1f8   :  { %v329_v9 = vmul.f32 %v328_v41, %v317_v4  ;;  %v330_v10 = vmul.f32 %v328_v41, %v318_v45  ;;  %v331_v11 = vmul.f32 %v328_v41, %v319_v5  ;;  %v334_v12 = vmul.f32 %v328_v41, %v322_v40 }
 0x1f9   :  { %v332_v13 = vmul.f32 %v328_v41, %v320_v62  ;;  %v333_v17 = vmul.f32 %v328_v41, %v321_v6  ;;  %v335_v18 = vmul.f32 %v328_v41, %v323_v1  ;;  %v336_v19 = vmul.f32 %v328_v41, %v324_v7 }
 0x1fa   :  { %v341_v20 = vadd.f32 %v340_v3, %v329_v9  ;;  %v342_v21 = vadd.f32 %v340_v3, %v330_v10  ;;  %v343_v22 = vadd.f32 %v340_v3, %v331_v11  ;;  %v346_v23 = vadd.f32 %v340_v3, %v334_v12 }
 0x1fb   :  { %v344_v24 = vadd.f32 %v340_v3, %v332_v13  ;;  %v345_v25 = vadd.f32 %v340_v3, %v333_v17  ;;  %v347_v26 = vadd.f32 %v340_v3, %v335_v18  ;;  %v348_v27 = vadd.f32 %v340_v3, %v336_v19 }
 0x1fc   :  { %v349_v28 = vmax.f32 %v341_v20, 0.0  ;;  %v350_v29 = vmax.f32 %v342_v21, 0.0  ;;  %v351_v30 = vmax.f32 %v343_v22, 0.0  ;;  %v354_v31 = vmax.f32 %v346_v23, 0.0  ;;  %v1579_v21 = vld [vmem:[%s2008_s5] sm:$0xff]   ;;  %v1580_v22 = vld [vmem:[%s2008_s5 + $0x8] sm:$0xff]  }
 0x1fd   :  { %v352_v32 = vmax.f32 %v344_v24, 0.0  ;;  %v353_v33 = vmax.f32 %v345_v25, 0.0  ;;  %v355_v35 = vmax.f32 %v347_v26, 0.0  ;;  %v356_v37 = vmax.f32 %v348_v27, 0.0  ;;  %v1581_v23 = vld [vmem:[%s2008_s5 + $0x10] sm:$0xff]  }
 0x1fe   :  { %v365_v38 = vpack.c.bf16 %v350_v29, %v349_v28 }
 0x1ff   :  { %v366_v39 = vpack.c.bf16 %v352_v32, %v351_v30  ;;  %v367_v42 = vpack.c.bf16 %v354_v31, %v353_v33  ;;  %v368_v43 = vpack.c.bf16 %v356_v37, %v355_v35 }
 0x200   :  { %1436 = vmatprep.subr.bf16.mxu1 %v365_v38 }
 0x201   :  { %1437 = vmatpush3.bf16.msra.mxu1 %v365_v38  ;;  %v1582_v38 = vld [vmem:[%s2008_s5 + $0x18] sm:$0xff]  }
 0x202   :  { %1438 = vmatprep.subr.bf16.mxu1 %v366_v39 }
 0x205   :  { %1439 = vmatpush3.bf16.msra.mxu1 %v366_v39 }
 0x206   :  { %1440 = vmatprep.subr.bf16.mxu1 %v367_v42 }
 0x209   :  { %1441 = vmatpush3.bf16.msra.mxu1 %v367_v42 }
 0x20a   :  { %1442 = vmatprep.subr.bf16.mxu1 %v368_v43 }
 0x20d   :  { %1443 = vmatpush3.bf16.msra.mxu1 %v368_v43 }
 0x20e   :  { %1468 = vmatprep.subr.bf16.mxu1 %v1575_v47 }
 0x210   :  { %1445 = vmatmul.mubr.msk.bf16.vlgmr.msra.gmra.mrb[8].mxu1 %vm76_vm0, %v1702_v14 }
 0x211   :  { %1448 = vmatprep.mubr.msk.bf16.mxu1 %vm76_vm0, %v1707_v15  ;;  %1469 = vmatpush3.bf16.msra.mxu1 %v1575_v47 }
 0x212   :  { %1470 = vmatprep.subr.bf16.mxu1 %v1576_v48 }
 0x215   :  { %1471 = vmatpush3.bf16.msra.mxu1 %v1576_v48 }
 0x216   :  { %1472 = vmatprep.subr.bf16.mxu1 %v1577_v61 }
 0x218   :  { %1449 = vmatmul.mubr.msk.bf16.gmra.mrb[12].mxu1 %vm76_vm0, %v1716_v16 }
 0x219   :  { %1473 = vmatpush3.bf16.msra.mxu1 %v1577_v61 }
 0x21a   :  { %1474 = vmatprep.subr.bf16.mxu1 %v1578_v63 }
 0x21d   :  { %1475 = vmatpush3.bf16.msra.mxu1 %v1578_v63 }
 0x21e   :  { %1500 = vmatprep.subr.bf16.mxu1 %v1579_v21 }
 0x2e3   :  { %v1446_v49 = vpop.f32.mrb[8].mxu1 }
 0x2e4   :  { %v403_v50 = vpop.f32.mrb[9].mxu1 }
 0x2e5   :  { %v1447_v51 = vpop.f32.mrb[10].mxu1 }
 0x2e6   :  { %v435_v52 = vpack.c.bf16 %v1447_v51, %v1446_v49  ;;  %v406_v53 = vpop.f32.mrb[11].mxu1 }
 0x2e7   :  { %v434_v54 = vpack.c.bf16 %v406_v53, %v403_v50 }
 0x2e9   :  { %1460 = vmatprep.mubr.msk.bf16.mxu0 %vm76_vm0, %v434_v54 }
 0x2ea   :  { %1461 = vmatmul.mubr.msk.bf16.vlgmr.msra.gmra.mrb[8].mxu0 %vm76_vm0, %v435_v52 }
 0x2eb   :  { %v1450_v55 = vpop.f32.mrb[12].mxu1 }
 0x2ec   :  { %v419_v56 = vpop.f32.mrb[13].mxu1 }
 0x2ed   :  { %v1451_v57 = vpop.f32.mrb[14].mxu1 }
 0x2ee   :  { %v437_v58 = vpack.c.bf16 %v1451_v57, %v1450_v55  ;;  %v422_v59 = vpop.f32.mrb[15].mxu1  ;;  %v1583_v55 = vld [vmem:[%s2009_s6] sm:$0xff]   ;;  %v1585_v57 = vld [vmem:[%s2009_s6 + $0x10] sm:$0xff]  }
 0x2ef   :  { %v436_v60 = vpack.c.bf16 %v422_v59, %v419_v56  ;;  %v1584_v56 = vld [vmem:[%s2009_s6 + $0x8] sm:$0xff]  }
 0x2f1   :  { %1464 = vmatprep.mubr.msk.bf16.mxu0 %vm76_vm0, %v436_v60 }
 0x2f2   :  { %1465 = vmatmul.mubr.msk.bf16.gmra.mrb[12].mxu0 %vm76_vm0, %v437_v58  ;;  %v739_v58 = vsub.s32 4, %v1738_v34 }
 0x2f3   :  { %1492 = vmatprep.mubr.msk.bf16.mxu0 %vm76_vm0, %v1686_v8 }
 0x2f4   :  { %v740_v59 = vrot.slane %v1744_v36, %v739_v58 }
 0x3bd   :  { %v1462_v41 = vpop.f32.mrb[8].mxu0 }
 0x3be   :  { %v512_v46 = vpop.f32.mrb[9].mxu0  ;;  %v521_v40 = vadd.f32 %v1462_v41, %v441_v2 }
 0x3bf   :  { %v1463_v3 = vpop.f32.mrb[10].mxu0  ;;  %v513_v5 = vadd.f32 %v512_v46, %v441_v2 }
 0x3c0   :  { %v524_v4 = vadd.f32 %v1463_v3, %v441_v2  ;;  %v515_v45 = vpop.f32.mrb[11].mxu0 }
 0x3c1   :  { %v516_v62 = vadd.f32 %v515_v45, %v441_v2 }
 0x3c2   :  { %v544_v6 = vpack.c.bf16 %v524_v4, %v521_v40 }
 0x3c3   :  { %v543_v1 = vpack.c.bf16 %v516_v62, %v513_v5 }
 0x3c5   :  { %v1466_v7 = vpop.f32.mrb[12].mxu0  ;;  %1476 = vmatprep.mubr.msk.bf16.mxu1 %vm76_vm0, %v543_v1 }
 0x3c6   :  { %v528_v9 = vpop.f32.mrb[13].mxu0  ;;  %1477 = vmatmul.mubr.msk.bf16.vlgmr.msra.gmra.mrb[16].mxu1 %vm76_vm0, %v544_v6  ;;  %v537_v11 = vadd.f32 %v1466_v7, %v441_v2 }
 0x3c7   :  { %v1467_v10 = vpop.f32.mrb[14].mxu0  ;;  %v529_v17 = vadd.f32 %v528_v9, %v441_v2  ;;  %1501 = vmatpush3.bf16.msra.mxu1 %v1579_v21 }
 0x3c8   :  { %v540_v12 = vadd.f32 %v1467_v10, %v441_v2  ;;  %v531_v13 = vpop.f32.mrb[15].mxu0  ;;  %1502 = vmatprep.subr.bf16.mxu1 %v1580_v22 }
 0x3c9   :  { %v532_v18 = vadd.f32 %v531_v13, %v441_v2 }
 0x3ca   :  { %v546_v19 = vpack.c.bf16 %v540_v12, %v537_v11 }
 0x3cb   :  { %v545_v20 = vpack.c.bf16 %v532_v18, %v529_v17  ;;  %1503 = vmatpush3.bf16.msra.mxu1 %v1580_v22 }
 0x3cc   :  { %1504 = vmatprep.subr.bf16.mxu1 %v1581_v23 }
 0x3cd   :  { %1480 = vmatprep.mubr.msk.bf16.mxu1 %vm76_vm0, %v545_v20 }
 0x3ce   :  { %1481 = vmatmul.mubr.msk.bf16.gmra.mrb[20].mxu1 %vm76_vm0, %v546_v19 }
 0x3cf   :  { %1505 = vmatpush3.bf16.msra.mxu1 %v1581_v23 }
 0x3d0   :  { %1506 = vmatprep.subr.bf16.mxu1 %v1582_v38 }
 0x3d3   :  { %1507 = vmatpush3.bf16.msra.mxu1 %v1582_v38 }
 0x499   :  { %v1478_v24 = vpop.f32.mrb[16].mxu1 }
 0x49a   :  { %v625_v25 = vpop.f32.mrb[17].mxu1 }
 0x49b   :  { %v1479_v26 = vpop.f32.mrb[18].mxu1 }
 0x49c   :  { %v665_v27 = vpack.c.bf16 %v1479_v26, %v1478_v24  ;;  %v628_v28 = vpop.f32.mrb[19].mxu1 }
 0x49d   :  { %v664_v29 = vpack.c.bf16 %v628_v28, %v625_v25 }
 0x49f   :  { %1484 = vmatprep.subr.bf16.mxu0 %v664_v29 }
 0x4a0   :  { %1485 = vmatpush3.bf16.msra.mxu0 %v664_v29 }
 0x4a1   :  { %v1482_v30 = vpop.f32.mrb[20].mxu1  ;;  %1486 = vmatprep.subr.bf16.mxu0 %v665_v27 }
 0x4a2   :  { %v641_v31 = vpop.f32.mrb[21].mxu1 }
 0x4a3   :  { %v1483_v32 = vpop.f32.mrb[22].mxu1 }
 0x4a4   :  { %v667_v33 = vpack.c.bf16 %v1483_v32, %v1482_v30  ;;  %v644_v35 = vpop.f32.mrb[23].mxu1  ;;  %1487 = vmatpush3.bf16.msra.mxu0 %v665_v27 }
 0x4a5   :  { %v666_v37 = vpack.c.bf16 %v644_v35, %v641_v31 }
 0x4a7   :  { %1488 = vmatprep.subr.bf16.mxu0 %v666_v37 }
 0x4a8   :  { %1489 = vmatpush3.bf16.msra.mxu0 %v666_v37 }
 0x4a9   :  { %1490 = vmatprep.subr.bf16.mxu0 %v667_v33 }
 0x4ac   :  { %1491 = vmatpush3.bf16.msra.mxu0 %v667_v33 }
 0x4ad   :  { %1516 = vmatprep.subr.bf16.mxu0 %v1583_v55 }
 0x4af   :  { %1493 = vmatmul.mubr.msk.bf16.vlgmr.msra.gmra.mrb[16].mxu0 %vm76_vm0, %v1702_v14 }
 0x4b0   :  { %1496 = vmatprep.mubr.msk.bf16.mxu0 %vm76_vm0, %v1707_v15  ;;  %1517 = vmatpush3.bf16.msra.mxu0 %v1583_v55 }
 0x4b1   :  { %1518 = vmatprep.subr.bf16.mxu0 %v1584_v56 }
 0x4b4   :  { %1519 = vmatpush3.bf16.msra.mxu0 %v1584_v56 }
 0x4b5   :  { %1520 = vmatprep.subr.bf16.mxu0 %v1585_v57 }
 0x4b7   :  { %1497 = vmatmul.mubr.msk.bf16.gmra.mrb[20].mxu0 %vm76_vm0, %v1716_v16 }
 0x4b8   :  { %1521 = vmatpush3.bf16.msra.mxu0 %v1585_v57 }
 0x582   :  { %v1494_v39 = vpop.f32.mrb[16].mxu0 }
 0x583   :  { %v702_v42 = vpop.f32.mrb[17].mxu0 }
 0x584   :  { %v1495_v43 = vpop.f32.mrb[18].mxu0 }
 0x585   :  { %v734_v44 = vpack.c.bf16 %v1495_v43, %v1494_v39  ;;  %v705_v47 = vpop.f32.mrb[19].mxu0 }
 0x586   :  { %v733_v48 = vpack.c.bf16 %v705_v47, %v702_v42 }
 0x588   :  { %1508 = vmatprep.mubr.msk.bf16.mxu1 %vm76_vm0, %v733_v48 }
 0x589   :  { %1509 = vmatmul.mubr.msk.bf16.vlgmr.msra.gmra.mrb[24].mxu1 %vm76_vm0, %v734_v44 }
 0x58a   :  { %v1498_v49 = vpop.f32.mrb[20].mxu0 }
 0x58b   :  { %v718_v50 = vpop.f32.mrb[21].mxu0 }
 0x58c   :  { %v1499_v51 = vpop.f32.mrb[22].mxu0 }
 0x58d   :  { %v736_v52 = vpack.c.bf16 %v1499_v51, %v1498_v49  ;;  %v721_v53 = vpop.f32.mrb[23].mxu0 }
 0x58e   :  { %v735_v54 = vpack.c.bf16 %v721_v53, %v718_v50 }
 0x590   :  { %1512 = vmatprep.mubr.msk.bf16.mxu1 %vm76_vm0, %v735_v54 }
 0x591   :  { %1513 = vmatmul.mubr.msk.bf16.gmra.mrb[28].mxu1 %vm76_vm0, %v736_v52 }
 0x592   :  { %1540 = vmatprep.mubr.msk.bf16.mxu1 %vm76_vm0, %v1686_v8  ;;  %v1586_v8 = vld [vmem:[%s2009_s6 + $0x18] sm:$0xff]  }
 0x593   :  { %1522 = vmatprep.subr.bf16.mxu0 %v1586_v8 }
 0x594   :  { %1523 = vmatpush3.bf16.msra.mxu0 %v1586_v8 }
 0x65c   :  { %v1510_v60 = vpop.f32.mrb[24].mxu1 }
 0x65d   :  { %v811_v61 = vpop.f32.mrb[25].mxu1  ;;  %v1874_v63 = vadd.f32 %v1510_v60, %v740_v59 }
 0x65e   :  { %v1876_v0 = vadd.f32 %v811_v61, %v740_v59  ;;  %v1511_v2 = vpop.f32.mrb[26].mxu1 }
 0x65f   :  { %v814_v41 = vpop.f32.mrb[27].mxu1  ;;  %v1880_v3 = vadd.f32 %v1511_v2, %v740_v59  ;;  %v866_v4 = vmul.f32 %v1874_v63, %v1874_v63  ;;  %v845_v1 = vsel %vm76_vm0, %v1874_v63, 0.0 }
 0x660   :  { %v864_v46 = vmul.f32 %v1876_v0, %v1876_v0  ;;  %v1882_v40 = vadd.f32 %v814_v41, %v740_v59  ;;  %v842_v45 = vsel %vm76_vm0, %v1876_v0, 0.0 }
 0x661   :  { %v867_v9 = vmul.f32 %v1880_v3, %v1880_v3  ;;  %v875_v18 = vsel %vm76_vm0, %v866_v4, 0.0  ;;  %v847_v19 = vsel %vm76_vm0, %v1880_v3, 0.0 }
 0x662   :  { %v843_v5 = vsel %vm76_vm0, %v1882_v40, 0.0  ;;  %v865_v62 = vmul.f32 %v1882_v40, %v1882_v40  ;;  %v872_v7 = vsel %vm76_vm0, %v864_v46, 0.0 }
 0x663   :  { %v844_v6 = vadd.f32 %v843_v5, %v842_v45  ;;  %v877_v26 = vsel %vm76_vm0, %v867_v9, 0.0 }
 0x664   :  { %v873_v10 = vsel %vm76_vm0, %v865_v62, 0.0  ;;  %v1514_v11 = vpop.f32.mrb[28].mxu1 }
 0x665   :  { %v846_v12 = vadd.f32 %v845_v1, %v844_v6  ;;  %v874_v13 = vadd.f32 %v873_v10, %v872_v7  ;;  %v827_v17 = vpop.f32.mrb[29].mxu1  ;;  %v1903_v23 = vadd.f32 %v1514_v11, %v740_v59 }
 0x666   :  { %v1901_v20 = vadd.f32 %v827_v17, %v740_v59  ;;  %v1515_v21 = vpop.f32.mrb[30].mxu1 }
 0x667   :  { %v876_v22 = vadd.f32 %v875_v18, %v874_v13  ;;  %v848_v24 = vadd.f32 %v847_v19, %v846_v12  ;;  %v830_v25 = vpop.f32.mrb[31].mxu1  ;;  %v839_v32 = vadd.f32 %v1515_v21, %v740_v59  ;;  %v870_v37 = vmul.f32 %v1903_v23, %v1903_v23 }
 0x668   :  { %v849_v27 = vsel %vm76_vm0, %v1901_v20, 0.0  ;;  %v868_v28 = vmul.f32 %v1901_v20, %v1901_v20  ;;  %v831_v29 = vadd.f32 %v830_v25, %v740_v59  ;;  %v853_v43 = vsel %vm76_vm0, %v1903_v23, 0.0 }
 0x669   :  { %v850_v30 = vadd.f32 %v849_v27, %v848_v24  ;;  %v878_v31 = vadd.f32 %v877_v26, %v876_v22  ;;  %v871_v44 = vmul.f32 %v839_v32, %v839_v32  ;;  %v855_v49 = vsel %vm76_vm0, %v839_v32, 0.0 }
 0x66a   :  { %v879_v33 = vsel %vm76_vm0, %v868_v28, 0.0  ;;  %v851_v35 = vsel %vm76_vm0, %v831_v29, 0.0  ;;  %v869_v42 = vmul.f32 %v831_v29, %v831_v29  ;;  %v883_v51 = vsel %vm76_vm0, %v870_v37, 0.0 }
 0x66b   :  { %v880_v38 = vadd.f32 %v879_v33, %v878_v31  ;;  %v852_v39 = vadd.f32 %v851_v35, %v850_v30  ;;  %v885_v54 = vsel %vm76_vm0, %v871_v44, 0.0  ;;  %v916_v21 = vsub.s32 5, %v1738_v34 }
 0x66c   :  { %v881_v48 = vsel %vm76_vm0, %v869_v42, 0.0  ;;  %v928_v22 = vsub.s32 6, %v1738_v34 }
 0x66d   :  { %v854_v47 = vadd.f32 %v853_v43, %v852_v39  ;;  %v882_v50 = vadd.f32 %v881_v48, %v880_v38 }
 0x66e   :  { %v929_v24 = vrot.slane %v1744_v36, %v928_v22  ;;  %v1597_v22 = vld [vmem:[%s2004_s1 + $0x10] sm:$0xff] }
 0x66f   :  { %v856_v52 = vadd.f32 %v855_v49, %v854_v47  ;;  %v884_v53 = vadd.f32 %v883_v51, %v882_v50 }
 0x671   :  { %v857_v55 = vrot.slane %v856_v52, 4  ;;  %v886_v56 = vadd.f32 %v885_v54, %v884_v53 }
 0x673   :  { %v858_v57 = vadd.f32 %v857_v55, %v856_v52  ;;  %v887_v8 = vrot.slane %v886_v56, 4 }
 0x675   :  { %v859_v58 = vrot.slane %v858_v57, 2  ;;  %v888_v59 = vadd.f32 %v887_v8, %v886_v56 }
 0x677   :  { %v860_v60 = vadd.f32 %v859_v58, %v858_v57  ;;  %v889_v61 = vrot.slane %v888_v59, 2 }
 0x679   :  { %v861_v2 = vrot.slane %v860_v60, 1  ;;  %v890_v41 = vadd.f32 %v889_v61, %v888_v59 }
 0x67b   :  { %v862_v46 = vadd.f32 %v861_v2, %v860_v60  ;;  %v891_v4 = vrot.slane %v890_v41, 1 }
 0x67d   :  { %v863_v45 = vmul.f32 0.015625, %v862_v46  ;;  %v892_v5 = vadd.f32 %v891_v4, %v890_v41 }
 0x67f   :  { %v894_v62 = vmul.f32 %v863_v45, %v863_v45  ;;  %v901_v6 = vsub.f32 %v831_v29, %v863_v45  ;;  %v896_v1 = vsub.f32 %v1876_v0, %v863_v45  ;;  %v897_v7 = vsub.f32 %v1882_v40, %v863_v45 }
 0x680   :  { %v893_v9 = vmul.f32 0.015625, %v892_v5  ;;  %v898_v10 = vsub.f32 %v1874_v63, %v863_v45  ;;  %v899_v11 = vsub.f32 %v1880_v3, %v863_v45  ;;  %v900_v12 = vsub.f32 %v1901_v20, %v863_v45 }
 0x681   :  { %v902_v13 = vsub.f32 %v1903_v23, %v863_v45  ;;  %v903_v17 = vsub.f32 %v839_v32, %v863_v45  ;;  %v917_v0 = vrot.slane %v1744_v36, %v916_v21 }
 0x682   :  { %v895_v18 = vsub.f32 %v893_v9, %v894_v62 }
 0x684   :  { %v904_v19 = vadd.f32 1e-05, %v895_v18 }
 0x686   :  { %1589 = vrsqrt.f32 %v904_v19 }
 0x690   :  { %v1590_v40 = vpop.eup %1589 }
 0x691   :  { %v911_v63 = vmul.f32 %v1590_v40, %v901_v6  ;;  %v906_v25 = vmul.f32 %v1590_v40, %v896_v1  ;;  %v907_v3 = vmul.f32 %v1590_v40, %v897_v7  ;;  %v908_v26 = vmul.f32 %v1590_v40, %v898_v10 }
 0x692   :  { %v909_v20 = vmul.f32 %v1590_v40, %v899_v11  ;;  %v910_v27 = vmul.f32 %v1590_v40, %v900_v12  ;;  %v912_v23 = vmul.f32 %v1590_v40, %v902_v13  ;;  %v913_v28 = vmul.f32 %v1590_v40, %v903_v17 }
 0x693   :  { %v923_v29 = vmul.f32 %v917_v0, %v911_v63  ;;  %v918_v30 = vmul.f32 %v917_v0, %v906_v25  ;;  %v919_v31 = vmul.f32 %v917_v0, %v907_v3  ;;  %v920_v32 = vmul.f32 %v917_v0, %v908_v26  ;;  %v1599_v63 = vld [vmem:[%s2004_s1 + $0x18] sm:$0xff]  ;;  %v1600_v3 = vld [vmem:[%s2004_s1 + $0x8] sm:$0xff] }
 0x694   :  { %v921_v33 = vmul.f32 %v917_v0, %v909_v20  ;;  %v922_v35 = vmul.f32 %v917_v0, %v910_v27  ;;  %v924_v37 = vmul.f32 %v917_v0, %v912_v23  ;;  %v925_v38 = vmul.f32 %v917_v0, %v913_v28 }
 0x695   :  { %v930_v39 = vadd.f32 %v929_v24, %v918_v30  ;;  %v931_v42 = vadd.f32 %v929_v24, %v919_v31  ;;  %v932_v43 = vadd.f32 %v929_v24, %v920_v32  ;;  %v935_v44 = vadd.f32 %v929_v24, %v923_v29 }
 0x696   :  { %v933_v47 = vadd.f32 %v929_v24, %v921_v33  ;;  %v934_v48 = vadd.f32 %v929_v24, %v922_v35  ;;  %v936_v49 = vadd.f32 %v929_v24, %v924_v37  ;;  %v937_v50 = vadd.f32 %v929_v24, %v925_v38 }
 0x697   :  { %v938_v51 = vmax.f32 %v930_v39, 0.0  ;;  %v939_v52 = vmax.f32 %v931_v42, 0.0  ;;  %v940_v53 = vmax.f32 %v932_v43, 0.0  ;;  %v943_v54 = vmax.f32 %v935_v44, 0.0 }
 0x698   :  { %v941_v55 = vmax.f32 %v933_v47, 0.0  ;;  %v942_v56 = vmax.f32 %v934_v48, 0.0  ;;  %v944_v57 = vmax.f32 %v936_v49, 0.0  ;;  %v945_v8 = vmax.f32 %v937_v50, 0.0  ;;  %v1601_v48 = vld [vmem:[%s2004_s1 + $0x30] sm:$0xff] }
 0x699   :  { %v954_v58 = vpack.c.bf16 %v939_v52, %v938_v51  ;;  %v1065_v11 = vsub.s32 7, %v1738_v34  ;;  %v1602_v52 = vld [vmem:[%s2004_s1 + $0x20] sm:$0xff] }
 0x69a   :  { %v955_v59 = vpack.c.bf16 %v941_v55, %v940_v53  ;;  %v956_v60 = vpack.c.bf16 %v943_v54, %v942_v56  ;;  %v957_v61 = vpack.c.bf16 %v945_v8, %v944_v57 }
 0x69b   :  { %1524 = vmatprep.mubr.msk.bf16.mxu0 %vm76_vm0, %v954_v58  ;;  %v1066_v12 = vrot.slane %v1744_v36, %v1065_v11 }
 0x69c   :  { %1525 = vmatmul.mubr.msk.bf16.vlgmr.msra.gmra.mrb[24].mxu0 %vm76_vm0, %v955_v59 }
 0x69d   :  { %1528 = vmatprep.mubr.msk.bf16.mxu0 %vm76_vm0, %v956_v60  ;;  %v1603_v60 = vld [vmem:[%s2004_s1 + $0x38] sm:$0xff] }
 0x6a4   :  { %1529 = vmatmul.mubr.msk.bf16.gmra.mrb[28].mxu0 %vm76_vm0, %v957_v61 }
 0x76f   :  { %v1526_v2 = vpop.f32.mrb[24].mxu0 }
 0x770   :  { %v1028_v41 = vpop.f32.mrb[25].mxu0 }
 0x771   :  { %v1527_v46 = vpop.f32.mrb[26].mxu0 }
 0x772   :  { %v1060_v4 = vpack.c.bf16 %v1527_v46, %v1526_v2  ;;  %v1031_v45 = vpop.f32.mrb[27].mxu0  ;;  %v1604_v2 = vld [vmem:[%s2004_s1 + $0x28] sm:$0xff] }
 0x773   :  { %v1059_v5 = vpack.c.bf16 %v1031_v45, %v1028_v41 }
 0x775   :  { %1532 = vmatprep.subr.bf16.mxu1 %v1059_v5 }
 0x776   :  { %1533 = vmatpush3.bf16.msra.mxu1 %v1059_v5 }
 0x777   :  { %v1530_v62 = vpop.f32.mrb[28].mxu0  ;;  %1534 = vmatprep.subr.bf16.mxu1 %v1060_v4 }
 0x778   :  { %v1044_v6 = vpop.f32.mrb[29].mxu0 }
 0x779   :  { %v1531_v1 = vpop.f32.mrb[30].mxu0 }
 0x77a   :  { %v1062_v7 = vpack.c.bf16 %v1531_v1, %v1530_v62  ;;  %v1047_v9 = vpop.f32.mrb[31].mxu0  ;;  %1535 = vmatpush3.bf16.msra.mxu1 %v1060_v4 }
 0x77b   :  { %v1061_v10 = vpack.c.bf16 %v1047_v9, %v1044_v6 }
 0x77d   :  { %1536 = vmatprep.subr.bf16.mxu1 %v1061_v10 }
 0x77e   :  { %1537 = vmatpush3.bf16.msra.mxu1 %v1061_v10 }
 0x77f   :  { %1538 = vmatprep.subr.bf16.mxu1 %v1062_v7 }
 0x782   :  { %1539 = vmatpush3.bf16.msra.mxu1 %v1062_v7 }
 0x785   :  { %1541 = vmatmul.mubr.msk.bf16.vlgmr.msra.gmra.mrb[32].mxu1 %vm76_vm0, %v1702_v14 }
 0x786   :  { %1544 = vmatprep.mubr.msk.bf16.mxu1 %vm76_vm0, %v1707_v15  ;;  %v1598_v15 = vld [vmem:[%s2004_s1] sm:$0xff]  ;;  %s1617_s1 = smov 112  }
 0x78d   :  { %1545 = vmatmul.mubr.msk.bf16.gmra.mrb[36].mxu1 %vm76_vm0, %v1716_v16 }
 0x858   :  { %v1542_v13 = vpop.f32.mrb[32].mxu1 }
 0x859   :  { %v1110_v17 = vadd.f32 %v1542_v13, %v1066_v12  ;;  %v1101_v18 = vpop.f32.mrb[33].mxu1 }
 0x85a   :  { %v1102_v19 = vadd.f32 %v1101_v18, %v1066_v12  ;;  %v1543_v21 = vpop.f32.mrb[34].mxu1 }
 0x85b   :  { %v1134_v14 = vsub.f32 %v1597_v22, %v1110_v17  ;;  %v1113_v0 = vadd.f32 %v1543_v21, %v1066_v12  ;;  %v1104_v40 = vpop.f32.mrb[35].mxu1  ;;  %v1179_v28 = vsel %vm174_vm1, %v1110_v17, 0.0 }
 0x85c   :  { %v1132_v16 = vsub.f32 %v1598_v15, %v1102_v19  ;;  %v1105_v34 = vadd.f32 %v1104_v40, %v1066_v12  ;;  %v1176_v36 = vsel %vm174_vm1, %v1102_v19, 0.0 }
 0x85d   :  { %v1135_v25 = vsub.f32 %v1599_v63, %v1113_v0  ;;  %v1142_v27 = vmul.f32 %v1134_v14, %v1134_v14  ;;  %v1181_v31 = vsel %vm174_vm1, %v1113_v0, 0.0 }
 0x85e   :  { %v1140_v24 = vmul.f32 %v1132_v16, %v1132_v16  ;;  %v1133_v26 = vsub.f32 %v1600_v3, %v1105_v34  ;;  %v1177_v20 = vsel %vm174_vm1, %v1105_v34, 0.0 }
 0x85f   :  { %v1178_v23 = vadd.f32 %v1177_v20, %v1176_v36  ;;  %v1143_v38 = vmul.f32 %v1135_v25, %v1135_v25  ;;  %v1151_v44 = vsel %vm174_vm1, %v1142_v27, 0.0 }
 0x860   :  { %v1141_v29 = vmul.f32 %v1133_v26, %v1133_v26  ;;  %v1546_v30 = vpop.f32.mrb[36].mxu1  ;;  %v1148_v37 = vsel %vm174_vm1, %v1140_v24, 0.0 }
 0x861   :  { %v1180_v32 = vadd.f32 %v1179_v28, %v1178_v23  ;;  %v1126_v33 = vadd.f32 %v1546_v30, %v1066_v12  ;;  %v1117_v35 = vpop.f32.mrb[37].mxu1  ;;  %v1153_v58 = vsel %vm174_vm1, %v1143_v38, 0.0 }
 0x862   :  { %v1149_v39 = vsel %vm174_vm1, %v1141_v29, 0.0  ;;  %v1118_v42 = vadd.f32 %v1117_v35, %v1066_v12  ;;  %v1547_v43 = vpop.f32.mrb[38].mxu1 }
 0x863   :  { %v1150_v47 = vadd.f32 %v1149_v39, %v1148_v37  ;;  %v1138_v49 = vsub.f32 %v1601_v48, %v1126_v33  ;;  %v1182_v50 = vadd.f32 %v1181_v31, %v1180_v32  ;;  %v1120_v51 = vpop.f32.mrb[39].mxu1  ;;  %v1129_v55 = vadd.f32 %v1547_v43, %v1066_v12 }
 0x864   :  { %v1136_v53 = vsub.f32 %v1602_v52, %v1118_v42  ;;  %v1183_v54 = vsel %vm174_vm1, %v1118_v42, 0.0  ;;  %v1121_v56 = vadd.f32 %v1120_v51, %v1066_v12  ;;  %v1187_v1 = vsel %vm174_vm1, %v1126_v33, 0.0 }
 0x865   :  { %v1152_v57 = vadd.f32 %v1151_v44, %v1150_v47  ;;  %v1184_v8 = vadd.f32 %v1183_v54, %v1182_v50  ;;  %v1139_v61 = vsub.f32 %v1603_v60, %v1129_v55  ;;  %v1146_v45 = vmul.f32 %v1138_v49, %v1138_v49 }
 0x866   :  { %v1144_v59 = vmul.f32 %v1136_v53, %v1136_v53  ;;  %v1137_v41 = vsub.f32 %v1604_v2, %v1121_v56  ;;  %v1185_v4 = vsel %vm174_vm1, %v1121_v56, 0.0  ;;  %v1189_v12 = vsel %vm174_vm1, %v1129_v55, 0.0 }
 0x867   :  { %v1154_v46 = vadd.f32 %v1153_v58, %v1152_v57  ;;  %v1186_v6 = vadd.f32 %v1185_v4, %v1184_v8  ;;  %v1147_v9 = vmul.f32 %v1139_v61, %v1139_v61  ;;  %v1159_v18 = vsel %vm174_vm1, %v1146_v45, 0.0 }
 0x868   :  { %v1155_v5 = vsel %vm174_vm1, %v1144_v59, 0.0  ;;  %v1145_v62 = vmul.f32 %v1137_v41, %v1137_v41 }
 0x869   :  { %v1156_v7 = vadd.f32 %v1155_v5, %v1154_v46  ;;  %v1188_v11 = vadd.f32 %v1187_v1, %v1186_v6  ;;  %v1161_v22 = vsel %vm174_vm1, %v1147_v9, 0.0 }
 0x86a   :  { %v1157_v10 = vsel %vm174_vm1, %v1145_v62, 0.0 }
 0x86b   :  { %v1158_v13 = vadd.f32 %v1157_v10, %v1156_v7  ;;  %v1190_v17 = vadd.f32 %v1189_v12, %v1188_v11 }
 0x86d   :  { %v1160_v19 = vadd.f32 %v1159_v18, %v1158_v13  ;;  %v1191_v21 = vrot.slane %v1190_v17, 4 }
 0x86f   :  { %v1162_v14 = vadd.f32 %v1161_v22, %v1160_v19  ;;  %v1192_v0 = vadd.f32 %v1191_v21, %v1190_v17 }
 0x871   :  { %v1193_v40 = vrot.slane %v1192_v0, 2 }
 0x873   :  { %v1194_v15 = vadd.f32 %v1193_v40, %v1192_v0 }
 0x875   :  { %v1195_v16 = vrot.slane %v1194_v15, 1 }
 0x877   :  { %v1196_v34 = vadd.f32 %v1195_v16, %v1194_v15 }
 0x879   :  { %v1197_v36 = vmul.f32 0.015625, %v1196_v34 }
 0x87b   :  { %1199 = vrot.lane.b32.xlu0 %v1197_v36, %s1617_s1  ;;  %v1214_v24 = vmul.f32 %v1197_v36, %v1197_v36 }
 0x87d   :  { %v1215_v63 = vsel %vm1203_vm2, %v1214_v24, 0.0 }
 0x87e   :  { %1216 = vadd.xlane.f32.xlu1 %v1215_v63 }
 0x89a   :  { %1163 = vadd.xlane.f32.xlu0 %v1162_v14 }
 0x8ed   :  { %v1200_v25 = vpop.permute.xlu0 %1199 }
 0x8ee   :  { %v1202_v3 = vmul.f32 %v1200_v25, %v1197_v36 }
 0x8f0   :  { %v1204_v26 = vsel %vm1203_vm2, %v1202_v3, 0.0 }
 0x8f1   :  { %1205 = vadd.xlane.f32.xlu1 %v1204_v26 }
 0x902   :  { %1236 = vrot.lane.b32.xlu1 %v1214_v24, %s1617_s1 }
 0x90b   :  { %v1217_v32 = vpop.xlane.xlu1 %1216 }
 0x90c   :  { %v1218_v33 = vrot.slane %v1217_v32, 4 }
 0x90e   :  { %v1219_v35 = vadd.f32 %v1218_v33, %v1217_v32 }
 0x910   :  { %v1220_v37 = vrot.slane %v1219_v35, 2 }
 0x912   :  { %v1221_v44 = vadd.f32 %v1220_v37, %v1219_v35 }
 0x914   :  { %v1222_v50 = vrot.slane %v1221_v44, 1 }
 0x916   :  { %v1223_v53 = vadd.f32 %v1222_v50, %v1221_v44 }
 0x927   :  { %v1164_v20 = vpop.xlane.xlu0 %1163 }
 0x928   :  { %v1165_v27 = vrot.slane %v1164_v20, 4 }
 0x92a   :  { %v1166_v23 = vadd.f32 %v1165_v27, %v1164_v20 }
 0x92c   :  { %v1167_v28 = vrot.slane %v1166_v23, 2 }
 0x92e   :  { %v1168_v29 = vadd.f32 %v1167_v28, %v1166_v23 }
 0x930   :  { %v1169_v30 = vrot.slane %v1168_v29, 1 }
 0x932   :  { %v1170_v31 = vadd.f32 %v1169_v30, %v1168_v29 }
 0x934   :  { %1548 = vpush %v1170_v31 }
 0x965   :  { %s1985_s27 = spop %1548 }
 0x966   :  { %s1174_s12 = smul.f32 0.00048828125, %s1985_s27 }
 0x968   :  { %s1175_s13 = smul.f32 2.0, %s1174_s12 }
 0x97e   :  { %v1206_v38 = vpop.xlane.xlu1 %1205 }
 0x97f   :  { %v1207_v39 = vrot.slane %v1206_v38, 4 }
 0x981   :  { %v1208_v42 = vadd.f32 %v1207_v39, %v1206_v38 }
 0x982   :  { %v1237_v43 = vpop.permute.xlu1 %1236 }
 0x983   :  { %v1209_v47 = vrot.slane %v1208_v42, 2  ;;  %v1239_v48 = vsel %vm1203_vm2, %v1237_v43, 0.0 }
 0x984   :  { %1240 = vadd.xlane.f32.xlu1 %v1239_v48 }
 0x985   :  { %v1210_v49 = vadd.f32 %v1209_v47, %v1208_v42 }
 0x987   :  { %v1211_v51 = vrot.slane %v1210_v49, 1 }
 0x989   :  { %v1212_v52 = vadd.f32 %v1211_v51, %v1210_v49 }
 0x98b   :  { %1550 = vpush %v1212_v52 }
 0x98c   :  { %1552 = vpush %v1223_v53 }
 0x9bc   :  { %s1987_s28 = spop %1550 }
 0x9bd   :  { %s1553_s29 = spop %1552 }
 0x9be   :  { %v1225_v54 = vstv %s1553_s29 }
 0x9bf   :  { %1591 = vrsqrt.f32 %v1225_v54  ;;  %vm1228_vm3 = vcmp.eq.f32.partialorder %v1225_v54, inf  ;;  %v1231_v57 = vand.u32 2147483648, %v1225_v54  ;;  %vm1230_vm4 = vcmp.eq.f32.partialorder %v1225_v54, 0.0 }
 0x9c9   :  { %v1592_v55 = vpop.eup %1591 }
 0x9ca   :  { %v1227_v56 = vmul.f32 %v1592_v55, %v1225_v54 }
 0x9cc   :  { %v1229_v8 = vsel %vm1228_vm3, %v1225_v54, %v1227_v56 }
 0x9cd   :  { %v1232_v58 = vsel %vm1230_vm4, %v1231_v57, %v1229_v8 }
 0x9ce   :  { %1554 = vpush %v1232_v58 }
 0x9ff   :  { %s1555_s30 = spop %1554 }
 0xa00   :  { %s1234_s0 = smax.f32 %s1618_s10, %s1555_s30 }
 0xa11   :  { %v1241_v59 = vpop.xlane.xlu1 %1240 }
 0xa12   :  { %v1242_v60 = vrot.slane %v1241_v59, 4 }
 0xa14   :  { %v1243_v61 = vadd.f32 %v1242_v60, %v1241_v59 }
 0xa16   :  { %v1244_v2 = vrot.slane %v1243_v61, 2 }
 0xa18   :  { %v1245_v41 = vadd.f32 %v1244_v2, %v1243_v61 }
 0xa1a   :  { %v1246_v46 = vrot.slane %v1245_v41, 1 }
 0xa1c   :  { %v1247_v4 = vadd.f32 %v1246_v46, %v1245_v41 }
 0xa1e   :  { %1556 = vpush %v1247_v4 }
 0xa4f   :  { %s1557_s9 = spop %1556 }
 0xa50   :  { %v1249_v45 = vstv %s1557_s9 }
 0xa51   :  { %1593 = vrsqrt.f32 %v1249_v45  ;;  %vm1252_vm5 = vcmp.eq.f32.partialorder %v1249_v45, inf  ;;  %v1255_v6 = vand.u32 2147483648, %v1249_v45  ;;  %vm1254_vm6 = vcmp.eq.f32.partialorder %v1249_v45, 0.0 }
 0xa5b   :  { %v1594_v5 = vpop.eup %1593 }
 0xa5c   :  { %v1251_v62 = vmul.f32 %v1594_v5, %v1249_v45 }
 0xa5e   :  { %v1253_v1 = vsel %vm1252_vm5, %v1249_v45, %v1251_v62 }
 0xa5f   :  { %v1256_v7 = vsel %vm1254_vm6, %v1255_v6, %v1253_v1 }
 0xa60   :  { %1558 = vpush %v1256_v7 }
 0xa91   :  { %s1559_s5 = spop %1558 }
 0xa92   :  { %s1258_s2 = smax.f32 %s1618_s10, %s1559_s5 }
 0xa93   :  { %s1259_s11 = smul.f32 %s1258_s2, %s1234_s0 }
 0xa95   :  { %v1260_v9 = vstv %s1259_s11 }
 0xa96   :  { %1595 = vrcp.f32 %v1260_v9 }
 0xaa0   :  { %v1596_v10 = vpop.eup %1595 }
 0xaa1   :  { %1560 = vpush %v1596_v10 }
 0xad2   :  { %s1561_s14 = spop %1560 }
 0xad3   :  { %s1263_s6 = smul.f32 %s1561_s14, %s1987_s28 }
 0xad5   :  { %s1264_s15 = ssub.f32 %s1175_s13, %s1263_s6 }
 0xad7   :  { %1266 = sst [smem:[#allocation2]] %s1264_s15 }
 0xad8   :  { %1614 = shalt.err (!%p1611_p2)
}
 0xad9   :  { %s1619_s3 = smov [#allocation2]  }
 0xada   :  { %1274 = dma.smem_to_hbm %s1619_s3, 16, %s2011_s8, [#allocation3]  }
 0xadb   :  { %1615 = dma.done.wait [#allocation3], 16  }
 0xadc   :  { %1616 = vsyncadd [#allocation3], 4294967280 }
 0xadd   :  { %1278 = sfence }
 0xade   :  { %1279 = vsyncpa [#allocation3], 1 }

</bundles_post_ra>
